<compile_context>
chip_gen: v7x
topology: tpu7x:2x2x1
jax: 0.10.0
libtpu: 0.0.40
codegen_flags: <defaults>
</compile_context>

<pallas_src>
import functools

import jax
import jax.numpy as jnp
from jax.experimental import pallas as pl
from jax.experimental.pallas import tpu as pltpu

_LANE = 128      # lane multiple for the last (D) dim of non-full-dim tiles
_SUBLANE = 32    # sublane multiple covering f32 (8), bf16 (16), 8-bit mask (32)


def _nan_mse_kernel(pred_ref, true_ref, means_ref, mask_ref, sq_acc, nv_acc,
                    *, n_rows, n_cols, n_tile, d_tile,
                    need_row_mask, need_col_mask):
    """One (n_tile, d_tile) tile; grid = (D tiles [parallel], N tiles [reduce])."""
    j = pl.program_id(0)   # D tile index (parallel axis)
    k = pl.program_id(1)   # N tile index (reduction axis, innermost)

    @pl.when(k == 0)
    def _init():
        sq_acc[...] = jnp.zeros_like(sq_acc)
        nv_acc[...] = jnp.zeros_like(nv_acc)

    y_true = true_ref[...]
    nan_mask = jnp.logical_not(jnp.isnan(y_true))        # (n_tile, d_tile) bool

    # Bounds mask for partial edge tiles.  Generated *statically* only when a
    # tile size does not divide its dimension, so exactly-tiled shapes pay
    # nothing; when present it is a few VPU ops per element — invisible next
    # to the HBM-bound streaming of the inputs.
    in_bounds = None
    if need_row_mask:
        rows = jax.lax.broadcasted_iota(jnp.int32, (n_tile, d_tile), 0)
        in_bounds = rows < (n_rows - k * n_tile)
    if need_col_mask:
        cols = jax.lax.broadcasted_iota(jnp.int32, (n_tile, d_tile), 1)
        col_ok = cols < (n_cols - j * d_tile)
        in_bounds = col_ok if in_bounds is None else jnp.logical_and(in_bounds, col_ok)

    valid = nan_mask if in_bounds is None else jnp.logical_and(nan_mask, in_bounds)

    # Same arithmetic as the PyTorch module, accumulated in f32:
    #   (y_pred * mask - masked_fill(y_true, ~mask, 0)) ** 2
    # NaN/Inf in y_pred at masked positions therefore still propagates into
    # that dimension's loss (NaN * 0 = NaN), matching the original exactly.
    y_pred_f = pred_ref[...].astype(jnp.float32) * nan_mask.astype(jnp.float32)
    y_true_f = jnp.where(nan_mask, y_true.astype(jnp.float32), 0.0)
    diff = y_pred_f - y_true_f
    sq_err = diff * diff
    if in_bounds is not None:
        # Select (not multiply): garbage (possibly NaN/Inf) in the unfilled
        # region of a partial edge tile must not leak into the sums.
        sq_err = jnp.where(in_bounds, sq_err, 0.0)

    sq_acc[...] += jnp.sum(sq_err, axis=0, keepdims=True)
    nv_acc[...] += jnp.sum(valid.astype(jnp.float32), axis=0, keepdims=True)

    # Mask written in the output ref's dtype (bool preferred: 8-bit in HBM, no
    # wrapper conversion pass).  The out-of-bounds region of a partial tile is
    # clipped by the write-back DMA.
    mask_ref[...] = valid.astype(mask_ref.dtype)

    @pl.when(k == pl.num_programs(1) - 1)
    def _finalize():
        n_valid = jnp.maximum(nv_acc[...], 1.0)          # clamp(min=1)
        means_ref[...] = sq_acc[...] / n_valid


def _as_supported_float(x):
    if x.dtype in (jnp.float32, jnp.bfloat16, jnp.float16):
        return x
    return x.astype(jnp.float32)


def multi_dim_nan_tolerant_mse(y_pred, y_true, *, d_tile=512, n_tile=1024):
    """Pallas-backed equivalent of MultiDimNaNTolerantMSELoss.forward.

    Returns (dim_means: (D,) float32, mask: (N, D) bool).

    Default tiles (n_tile=1024, d_tile=512) keep the double-buffered streams
    (two inputs + 8-bit mask output) under ~10 MiB of VMEM — safe for the
    default scoped limits on v5e (16 MiB) and v6e/v7x (32 MiB).
    """
    assert y_pred.shape == y_true.shape, (
        "Predictions and targets must have the same shape")
    assert y_pred.ndim == 2, "Expected (batch, target_dims) inputs"
    N, D = y_pred.shape

    # Read in native floating dtype (bf16 stays bf16 through HBM).
    y_pred = _as_supported_float(y_pred)
    y_true = _as_supported_float(y_true)

    # ---- tile selection: no input padding; ragged edges use partial blocks.
    if D <= d_tile:
        d_tile_eff = D                                    # full-dim block
    else:
        d_tile_eff = max(_LANE, (d_tile // _LANE) * _LANE)
    if N <= n_tile:
        n_tile_eff = N                                    # full-dim block
    else:
        n_tile_eff = max(_SUBLANE, (n_tile // _SUBLANE) * _SUBLANE)

    grid = (pl.cdiv(D, d_tile_eff), pl.cdiv(N, n_tile_eff))
    need_row_mask = (N % n_tile_eff) != 0
    need_col_mask = (D % d_tile_eff) != 0

    kernel = functools.partial(
        _nan_mse_kernel,
        n_rows=N, n_cols=D, n_tile=n_tile_eff, d_tile=d_tile_eff,
        need_row_mask=need_row_mask, need_col_mask=need_col_mask)

    def _call(mask_dtype):
        return pl.pallas_call(
            kernel,
            out_shape=(
                jax.ShapeDtypeStruct((1, D), jnp.float32),
                jax.ShapeDtypeStruct((N, D), mask_dtype),
            ),
            grid_spec=pltpu.PrefetchScalarGridSpec(
                num_scalar_prefetch=0,
                grid=grid,
                in_specs=[
                    pl.BlockSpec((n_tile_eff, d_tile_eff), lambda j, k: (k, j)),
                    pl.BlockSpec((n_tile_eff, d_tile_eff), lambda j, k: (k, j)),
                ],
                out_specs=(
                    pl.BlockSpec((1, d_tile_eff), lambda j, k: (0, j)),
                    pl.BlockSpec((n_tile_eff, d_tile_eff), lambda j, k: (k, j)),
                ),
                scratch_shapes=[
                    pltpu.VMEM((1, d_tile_eff), jnp.float32),  # sum sq error
                    pltpu.VMEM((1, d_tile_eff), jnp.float32),  # valid counts
                ],
            ),
            compiler_params=pltpu.CompilerParams(
                dimension_semantics=("parallel", "arbitrary")),
        )(y_pred, y_true)

    try:
        # Preferred path: bool mask straight out of the kernel (8-bit in HBM),
        # no extra N*D elementwise conversion pass in the wrapper.
        means2d, mask = _call(jnp.bool_)
    except Exception:
        # Fallback for backends without bool ref support: int8 out + convert.
        means2d, mask_i8 = _call(jnp.int8)
        mask = mask_i8.astype(jnp.bool_)

    return means2d[0], mask


def _reference(y_pred, y_true):
    """Pure-JAX reference mirroring the PyTorch forward (f32 accumulation)."""
    y_pred = y_pred.astype(jnp.float32)
    y_true = y_true.astype(jnp.float32)
    mask = jnp.logical_not(jnp.isnan(y_true))
    n_valid = jnp.maximum(jnp.sum(mask, axis=0), 1).astype(jnp.float32)
    y_pred_m = y_pred * mask
    y_true_m = jnp.where(mask, y_true, 0.0)
    dim_losses = jnp.sum((y_pred_m - y_true_m) ** 2, axis=0)
    return dim_losses / n_valid, mask


def _run_case(key, N, D, dtype, **tile_kwargs):
    k1, k2, k3 = jax.random.split(key, 3)
    y_pred = jax.random.normal(k1, (N, D), dtype=jnp.float32).astype(dtype)
    y_true = jax.random.normal(k2, (N, D), dtype=jnp.float32).astype(dtype)
    nan_mask = jax.random.bernoulli(k3, p=0.3, shape=(N, D))
    y_true = jnp.where(nan_mask, jnp.nan, y_true).astype(dtype)
    # One fully-NaN column exercises the clamp(min=1) path.
    y_true = y_true.at[:, 1].set(jnp.nan)

    dim_means, mask = multi_dim_nan_tolerant_mse(y_pred, y_true, **tile_kwargs)
    jax.block_until_ready((dim_means, mask))

    ref_means, ref_mask = _reference(y_pred, y_true)
    assert dim_means.shape == (D,) and dim_means.dtype == jnp.float32
    assert mask.shape == (N, D) and mask.dtype == jnp.bool_
    assert jnp.allclose(dim_means, ref_means, rtol=1e-5, atol=1e-6)
    assert jnp.array_equal(mask, ref_mask)


if __name__ == "__main__":
    key = jax.random.PRNGKey(0)
    ka, kb, kc = jax.random.split(key, 3)

    # 1) Lane-aligned f32, single full-dim block.
    _run_case(ka, N=8, D=256, dtype=jnp.float32)
    # 2) Ragged bf16 (no padding, native bf16 reads, full-dim block).
    _run_case(kb, N=10, D=200, dtype=jnp.bfloat16)
    # 3) Multi-tile grid with partial edge tiles on both axes: exercises the
    #    in-kernel bounds masking and cross-step accumulation.
    _run_case(kc, N=50, D=300, dtype=jnp.float32, n_tile=32, d_tile=128)

    print("KERNEL_OK")
</pallas_src>

<mosaic_0001>
module attributes {stable_mosaic.version = 11 : i64} {
  func.func @_nan_mse_kernel(%arg0: i32, %arg1: i32, %arg2: memref<8x256xf32, #tpu.memory_space<vmem>>, %arg3: memref<8x256xf32, #tpu.memory_space<vmem>>, %arg4: memref<1x256xf32, #tpu.memory_space<vmem>>, %arg5: memref<8x256xi32, #tpu.memory_space<vmem>>, %arg6: memref<1x256xf32, #tpu.memory_space<vmem>>, %arg7: memref<1x256xf32, #tpu.memory_space<vmem>>) attributes {dimension_semantics = [#tpu.dimension_semantics<parallel>, #tpu.dimension_semantics<arbitrary>], iteration_bounds = array<i64: 1, 1>, scalar_prefetch = 0 : i64, scratch_operands = 2 : i64, tpu.core_type = #tpu.core_type<tc>, window_params = [{transform_indices = @transform_0, window_bounds = array<i64: 8, 256>}, {transform_indices = @transform_1, window_bounds = array<i64: 8, 256>}, {transform_indices = @transform_2, window_bounds = array<i64: 1, 256>}, {transform_indices = @transform_3, window_bounds = array<i64: 8, 256>}]} {
    %c0_i32 = arith.constant 0 : i32
    %0 = arith.cmpi eq, %arg1, %c0_i32 : i32
    %1 = arith.extui %0 : i1 to i32
    %c0_i32_0 = arith.constant 0 : i32
    %2 = arith.cmpi ne, %1, %c0_i32_0 : i32
    scf.if %2 {
      %cst_20 = arith.constant 0.000000e+00 : f32
      %32 = vector.broadcast %cst_20 : f32 to vector<1x256xf32>
      %c0_21 = arith.constant 0 : index
      %c0_22 = arith.constant 0 : index
      %33 = vector.load %arg6[%c0_21, %c0_22] : memref<1x256xf32, #tpu.memory_space<vmem>>, vector<1x256xf32>
      tpu.vector_store %arg6[%c0_21, %c0_22], %32 {strides = array<i32>} : memref<1x256xf32, #tpu.memory_space<vmem>>, vector<1x256xf32>,
      %cst_23 = arith.constant 0.000000e+00 : f32
      %34 = vector.broadcast %cst_23 : f32 to vector<1x256xf32>
      %c0_24 = arith.constant 0 : index
      %c0_25 = arith.constant 0 : index
      %35 = vector.load %arg7[%c0_24, %c0_25] : memref<1x256xf32, #tpu.memory_space<vmem>>, vector<1x256xf32>
      tpu.vector_store %arg7[%c0_24, %c0_25], %34 {strides = array<i32>} : memref<1x256xf32, #tpu.memory_space<vmem>>, vector<1x256xf32>,
    } else {
    }
    %c0 = arith.constant 0 : index
    %c0_1 = arith.constant 0 : index
    %3 = vector.load %arg3[%c0, %c0_1] : memref<8x256xf32, #tpu.memory_space<vmem>>, vector<8x256xf32>
    %4 = arith.cmpf one, %3, %3 : vector<8x256xf32>
    %cst = arith.constant dense<true> : vector<8x256xi1>
    %5 = arith.xori %4, %cst : vector<8x256xi1>
    %c0_2 = arith.constant 0 : index
    %c0_3 = arith.constant 0 : index
    %6 = vector.load %arg2[%c0_2, %c0_3] : memref<8x256xf32, #tpu.memory_space<vmem>>, vector<8x256xf32>
    %7 = arith.extui %5 : vector<8x256xi1> to vector<8x256xi32>
    %8 = arith.sitofp %7 : vector<8x256xi32> to vector<8x256xf32>
    %9 = arith.mulf %6, %8 : vector<8x256xf32>
    %cst_4 = arith.constant 0.000000e+00 : f32
    %10 = vector.broadcast %cst_4 : f32 to vector<8x256xf32>
    %11 = arith.select %5, %3, %10 : vector<8x256xi1>, vector<8x256xf32>
    %12 = arith.subf %9, %11 : vector<8x256xf32>
    %13 = arith.mulf %12, %12 : vector<8x256xf32>
    %c0_5 = arith.constant 0 : index
    %c0_6 = arith.constant 0 : index
    %14 = vector.load %arg6[%c0_5, %c0_6] : memref<1x256xf32, #tpu.memory_space<vmem>>, vector<1x256xf32>
    %cst_7 = arith.constant dense<0.000000e+00> : vector<256xf32>
    %15 = vector.multi_reduction <add>, %13, %cst_7 [0] : vector<8x256xf32> to vector<256xf32>
    %16 = vector.shape_cast %15 : vector<256xf32> to vector<1x256xf32>
    %17 = arith.addf %14, %16 : vector<1x256xf32>
    %c0_8 = arith.constant 0 : index
    %c0_9 = arith.constant 0 : index
    %18 = vector.load %arg6[%c0_8, %c0_9] : memref<1x256xf32, #tpu.memory_space<vmem>>, vector<1x256xf32>
    tpu.vector_store %arg6[%c0_8, %c0_9], %17 {strides = array<i32>} : memref<1x256xf32, #tpu.memory_space<vmem>>, vector<1x256xf32>,
    %c0_10 = arith.constant 0 : index
    %c0_11 = arith.constant 0 : index
    %19 = vector.load %arg7[%c0_10, %c0_11] : memref<1x256xf32, #tpu.memory_space<vmem>>, vector<1x256xf32>
    %20 = arith.extui %5 : vector<8x256xi1> to vector<8x256xi32>
    %21 = arith.sitofp %20 : vector<8x256xi32> to vector<8x256xf32>
    %cst_12 = arith.constant dense<0.000000e+00> : vector<256xf32>
    %22 = vector.multi_reduction <add>, %21, %cst_12 [0] : vector<8x256xf32> to vector<256xf32>
    %23 = vector.shape_cast %22 : vector<256xf32> to vector<1x256xf32>
    %24 = arith.addf %19, %23 : vector<1x256xf32>
    %c0_13 = arith.constant 0 : index
    %c0_14 = arith.constant 0 : index
    %25 = vector.load %arg7[%c0_13, %c0_14] : memref<1x256xf32, #tpu.memory_space<vmem>>, vector<1x256xf32>
    tpu.vector_store %arg7[%c0_13, %c0_14], %24 {strides = array<i32>} : memref<1x256xf32, #tpu.memory_space<vmem>>, vector<1x256xf32>,
    %c0_15 = arith.constant 0 : index
    %c0_16 = arith.constant 0 : index
    %26 = vector.load %arg5[%c0_15, %c0_16] : memref<8x256xi32, #tpu.memory_space<vmem>>, vector<8x256xi32>
    %27 = arith.extui %5 : vector<8x256xi1> to vector<8x256xi32>
    %cst_17 = arith.constant dense<0> : vector<8x256xi32>
    %28 = arith.cmpi ne, %26, %cst_17 : vector<8x256xi32>
    tpu.vector_store %arg5[%c0_15, %c0_16], %27 {strides = array<i32>} : memref<8x256xi32, #tpu.memory_space<vmem>>, vector<8x256xi32>,
    %c0_i32_18 = arith.constant 0 : i32
    %29 = arith.cmpi eq, %arg1, %c0_i32_18 : i32
    %30 = arith.extui %29 : i1 to i32
    %c0_i32_19 = arith.constant 0 : i32
    %31 = arith.cmpi ne, %30, %c0_i32_19 : i32
    scf.if %31 {
      %c0_20 = arith.constant 0 : index
      %c0_21 = arith.constant 0 : index
      %32 = vector.load %arg7[%c0_20, %c0_21] : memref<1x256xf32, #tpu.memory_space<vmem>>, vector<1x256xf32>
      %cst_22 = arith.constant 1.000000e+00 : f32
      %33 = vector.broadcast %cst_22 : f32 to vector<1x256xf32>
      %34 = arith.maximumf %32, %33 : vector<1x256xf32>
      %c0_23 = arith.constant 0 : index
      %c0_24 = arith.constant 0 : index
      %35 = vector.load %arg6[%c0_23, %c0_24] : memref<1x256xf32, #tpu.memory_space<vmem>>, vector<1x256xf32>
      %36 = arith.divf %35, %34 : vector<1x256xf32>
      %c0_25 = arith.constant 0 : index
      %c0_26 = arith.constant 0 : index
      %37 = vector.load %arg4[%c0_25, %c0_26] : memref<1x256xf32, #tpu.memory_space<vmem>>, vector<1x256xf32>
      tpu.vector_store %arg4[%c0_25, %c0_26], %36 {strides = array<i32>} : memref<1x256xf32, #tpu.memory_space<vmem>>, vector<1x256xf32>,
    } else {
    }
    return
  }
  func.func @transform_0(%arg0: i32, %arg1: i32) -> (i32, i32) {
    %c0_i32 = arith.constant 0 : i32
    return %arg1, %arg0 : i32, i32
  }
  func.func @transform_1(%arg0: i32, %arg1: i32) -> (i32, i32) {
    %c0_i32 = arith.constant 0 : i32
    return %arg1, %arg0 : i32, i32
  }
  func.func @transform_2(%arg0: i32, %arg1: i32) -> (i32, i32) {
    %c0_i32 = arith.constant 0 : i32
    %c0_i32_0 = arith.constant 0 : i32
    return %c0_i32, %arg0 : i32, i32
  }
  func.func @transform_3(%arg0: i32, %arg1: i32) -> (i32, i32) {
    %c0_i32 = arith.constant 0 : i32
    return %arg1, %arg0 : i32, i32
  }
}

module attributes {stable_mosaic.version = 11 : i64} {
  func.func @_nan_mse_kernel(%arg0: i32, %arg1: i32, %arg2: memref<8x256xf32, #tpu.memory_space<vmem>>, %arg3: memref<8x256xf32, #tpu.memory_space<vmem>>, %arg4: memref<1x256xf32, #tpu.memory_space<vmem>>, %arg5: memref<8x256xi8, #tpu.memory_space<vmem>>, %arg6: memref<1x256xf32, #tpu.memory_space<vmem>>, %arg7: memref<1x256xf32, #tpu.memory_space<vmem>>) attributes {dimension_semantics = [#tpu.dimension_semantics<parallel>, #tpu.dimension_semantics<arbitrary>], iteration_bounds = array<i64: 1, 1>, scalar_prefetch = 0 : i64, scratch_operands = 2 : i64, tpu.core_type = #tpu.core_type<tc>, window_params = [{transform_indices = @transform_0, window_bounds = array<i64: 8, 256>}, {transform_indices = @transform_1, window_bounds = array<i64: 8, 256>}, {transform_indices = @transform_2, window_bounds = array<i64: 1, 256>}, {transform_indices = @transform_3, window_bounds = array<i64: 8, 256>}]} {
    %c0_i32 = arith.constant 0 : i32
    %0 = arith.cmpi eq, %arg1, %c0_i32 : i32
    %1 = arith.extui %0 : i1 to i32
    %c0_i32_0 = arith.constant 0 : i32
    %2 = arith.cmpi ne, %1, %c0_i32_0 : i32
    scf.if %2 {
      %cst_19 = arith.constant 0.000000e+00 : f32
      %31 = vector.broadcast %cst_19 : f32 to vector<1x256xf32>
      %c0_20 = arith.constant 0 : index
      %c0_21 = arith.constant 0 : index
      %32 = vector.load %arg6[%c0_20, %c0_21] : memref<1x256xf32, #tpu.memory_space<vmem>>, vector<1x256xf32>
      tpu.vector_store %arg6[%c0_20, %c0_21], %31 {strides = array<i32>} : memref<1x256xf32, #tpu.memory_space<vmem>>, vector<1x256xf32>,
      %cst_22 = arith.constant 0.000000e+00 : f32
      %33 = vector.broadcast %cst_22 : f32 to vector<1x256xf32>
      %c0_23 = arith.constant 0 : index
      %c0_24 = arith.constant 0 : index
      %34 = vector.load %arg7[%c0_23, %c0_24] : memref<1x256xf32, #tpu.memory_space<vmem>>, vector<1x256xf32>
      tpu.vector_store %arg7[%c0_23, %c0_24], %33 {strides = array<i32>} : memref<1x256xf32, #tpu.memory_space<vmem>>, vector<1x256xf32>,
    } else {
    }
    %c0 = arith.constant 0 : index
    %c0_1 = arith.constant 0 : index
    %3 = vector.load %arg3[%c0, %c0_1] : memref<8x256xf32, #tpu.memory_space<vmem>>, vector<8x256xf32>
    %4 = arith.cmpf one, %3, %3 : vector<8x256xf32>
    %cst = arith.constant dense<true> : vector<8x256xi1>
    %5 = arith.xori %4, %cst : vector<8x256xi1>
    %c0_2 = arith.constant 0 : index
    %c0_3 = arith.constant 0 : index
    %6 = vector.load %arg2[%c0_2, %c0_3] : memref<8x256xf32, #tpu.memory_space<vmem>>, vector<8x256xf32>
    %7 = arith.extui %5 : vector<8x256xi1> to vector<8x256xi32>
    %8 = arith.sitofp %7 : vector<8x256xi32> to vector<8x256xf32>
    %9 = arith.mulf %6, %8 : vector<8x256xf32>
    %cst_4 = arith.constant 0.000000e+00 : f32
    %10 = vector.broadcast %cst_4 : f32 to vector<8x256xf32>
    %11 = arith.select %5, %3, %10 : vector<8x256xi1>, vector<8x256xf32>
    %12 = arith.subf %9, %11 : vector<8x256xf32>
    %13 = arith.mulf %12, %12 : vector<8x256xf32>
    %c0_5 = arith.constant 0 : index
    %c0_6 = arith.constant 0 : index
    %14 = vector.load %arg6[%c0_5, %c0_6] : memref<1x256xf32, #tpu.memory_space<vmem>>, vector<1x256xf32>
    %cst_7 = arith.constant dense<0.000000e+00> : vector<256xf32>
    %15 = vector.multi_reduction <add>, %13, %cst_7 [0] : vector<8x256xf32> to vector<256xf32>
    %16 = vector.shape_cast %15 : vector<256xf32> to vector<1x256xf32>
    %17 = arith.addf %14, %16 : vector<1x256xf32>
    %c0_8 = arith.constant 0 : index
    %c0_9 = arith.constant 0 : index
    %18 = vector.load %arg6[%c0_8, %c0_9] : memref<1x256xf32, #tpu.memory_space<vmem>>, vector<1x256xf32>
    tpu.vector_store %arg6[%c0_8, %c0_9], %17 {strides = array<i32>} : memref<1x256xf32, #tpu.memory_space<vmem>>, vector<1x256xf32>,
    %c0_10 = arith.constant 0 : index
    %c0_11 = arith.constant 0 : index
    %19 = vector.load %arg7[%c0_10, %c0_11] : memref<1x256xf32, #tpu.memory_space<vmem>>, vector<1x256xf32>
    %20 = arith.extui %5 : vector<8x256xi1> to vector<8x256xi32>
    %21 = arith.sitofp %20 : vector<8x256xi32> to vector<8x256xf32>
    %cst_12 = arith.constant dense<0.000000e+00> : vector<256xf32>
    %22 = vector.multi_reduction <add>, %21, %cst_12 [0] : vector<8x256xf32> to vector<256xf32>
    %23 = vector.shape_cast %22 : vector<256xf32> to vector<1x256xf32>
    %24 = arith.addf %19, %23 : vector<1x256xf32>
    %c0_13 = arith.constant 0 : index
    %c0_14 = arith.constant 0 : index
    %25 = vector.load %arg7[%c0_13, %c0_14] : memref<1x256xf32, #tpu.memory_space<vmem>>, vector<1x256xf32>
    tpu.vector_store %arg7[%c0_13, %c0_14], %24 {strides = array<i32>} : memref<1x256xf32, #tpu.memory_space<vmem>>, vector<1x256xf32>,
    %26 = arith.extui %5 : vector<8x256xi1> to vector<8x256xi8>
    %c0_15 = arith.constant 0 : index
    %c0_16 = arith.constant 0 : index
    %27 = vector.load %arg5[%c0_15, %c0_16] : memref<8x256xi8, #tpu.memory_space<vmem>>, vector<8x256xi8>
    tpu.vector_store %arg5[%c0_15, %c0_16], %26 {strides = array<i32>} : memref<8x256xi8, #tpu.memory_space<vmem>>, vector<8x256xi8>,
    %c0_i32_17 = arith.constant 0 : i32
    %28 = arith.cmpi eq, %arg1, %c0_i32_17 : i32
    %29 = arith.extui %28 : i1 to i32
    %c0_i32_18 = arith.constant 0 : i32
    %30 = arith.cmpi ne, %29, %c0_i32_18 : i32
    scf.if %30 {
      %c0_19 = arith.constant 0 : index
      %c0_20 = arith.constant 0 : index
      %31 = vector.load %arg7[%c0_19, %c0_20] : memref<1x256xf32, #tpu.memory_space<vmem>>, vector<1x256xf32>
      %cst_21 = arith.constant 1.000000e+00 : f32
      %32 = vector.broadcast %cst_21 : f32 to vector<1x256xf32>
      %33 = arith.maximumf %31, %32 : vector<1x256xf32>
      %c0_22 = arith.constant 0 : index
      %c0_23 = arith.constant 0 : index
      %34 = vector.load %arg6[%c0_22, %c0_23] : memref<1x256xf32, #tpu.memory_space<vmem>>, vector<1x256xf32>
      %35 = arith.divf %34, %33 : vector<1x256xf32>
      %c0_24 = arith.constant 0 : index
      %c0_25 = arith.constant 0 : index
      %36 = vector.load %arg4[%c0_24, %c0_25] : memref<1x256xf32, #tpu.memory_space<vmem>>, vector<1x256xf32>
      tpu.vector_store %arg4[%c0_24, %c0_25], %35 {strides = array<i32>} : memref<1x256xf32, #tpu.memory_space<vmem>>, vector<1x256xf32>,
    } else {
    }
    return
  }
  func.func @transform_0(%arg0: i32, %arg1: i32) -> (i32, i32) {
    %c0_i32 = arith.constant 0 : i32
    return %arg1, %arg0 : i32, i32
  }
  func.func @transform_1(%arg0: i32, %arg1: i32) -> (i32, i32) {
    %c0_i32 = arith.constant 0 : i32
    return %arg1, %arg0 : i32, i32
  }
  func.func @transform_2(%arg0: i32, %arg1: i32) -> (i32, i32) {
    %c0_i32 = arith.constant 0 : i32
    %c0_i32_0 = arith.constant 0 : i32
    return %c0_i32, %arg0 : i32, i32
  }
  func.func @transform_3(%arg0: i32, %arg1: i32) -> (i32, i32) {
    %c0_i32 = arith.constant 0 : i32
    return %arg1, %arg0 : i32, i32
  }
}

</mosaic_0001>

<bundles_post_ra>
// kernel: tpu_custom_call.1
= control target key start
LH: loop header
LB: loop body
LE: loop exit
PB: predicated region body
PF: predicated region fallthrough
CT: control target
= control target key end

     0   :  { %9 = vsyncpa [#allocation5], 0  ;;  %s345_s0 = inlined_call_operand.hbm [shape: f32[8,256], index: 0, kind: input, shape index: {}]   ;;  %s346_s1 = inlined_call_operand.hbm [shape: f32[8,256], index: 1, kind: input, shape index: {}]   ;;  %s347_s2 = inlined_call_operand.hbm [shape: f32[1,256], index: 2, kind: output, shape index: {0}]   ;;  %s348_s3 = inlined_call_operand.vmem [shape: s32[8,256], index: 3, kind: output, shape index: {1}]  }
   0x1   :  { %10 = vsyncpa [#allocation8], 0 }
   0x2   :  { %11 = vsyncpa [#allocation6], 0  ;;  %s252_s12 = smov [#allocation4]   ;;  %s253_s14 = smov [#allocation7]  }
   0x3   :  { %s18_s13 = sshll.u32 %s252_s12, 4  ;;  %s28_s15 = sshll.u32 %s253_s14, 4  ;;  %s19_s13 = int_to_ptr.vmem [resolvable:$true] %s18_s13  ;;  %s29_s15 = int_to_ptr.vmem [resolvable:$true] %s28_s15 }
   0x4   :  { %s180_s18 = scalar_lea.hbm %s345_s0, 256 }
   0x5   :  { %p181_p0 = scmp.ne.s32.totalorder %s345_s0, %s180_s18  ;;  %p184_p1 = scmp.lt.u32.totalorder %s180_s18, %s345_s0 }
   0x7   :  { %p186_p2 = pnand %p184_p1, %p181_p0 }
   0x9   :  { %189 = shalt.err (!%p186_p2)
}
   0xa   :  { %s190_s23 = scalar_lea.vmem %s19_s13, 256  ;;  %p195_p4 = scmp.lt.s32.totalorder %s19_s13, %s19_s13 }
   0xb   :  { %p191_p3 = scmp.ne.s32.totalorder %s19_s13, %s190_s23  ;;  %p196_p5 = scmp.lt.s32.totalorder %s190_s23, %s190_s23 }
   0xd   :  { %p197_p6 = por %p196_p5, %p195_p4 }
   0xf   :  { %p198_p7 = pnand %p197_p6, %p191_p3 }
  0x11   :  { %201 = shalt.err (!%p198_p7)
}
  0x12   :  { %21 = dma.hbm_to_vmem [thread:$0]  %s345_s0, 256, %s19_s13, [#allocation5]  }
  0x13   :  { %s202_s28 = scalar_lea.hbm %s346_s1, 256 }
  0x14   :  { %p203_p8 = scmp.ne.s32.totalorder %s346_s1, %s202_s28  ;;  %p206_p9 = scmp.lt.u32.totalorder %s202_s28, %s346_s1 }
  0x16   :  { %p208_p10 = pnand %p206_p9, %p203_p8 }
  0x18   :  { %211 = shalt.err (!%p208_p10)
}
  0x19   :  { %s212_s6 = scalar_lea.vmem %s29_s15, 256  ;;  %p217_p12 = scmp.lt.s32.totalorder %s29_s15, %s29_s15 }
  0x1a   :  { %p213_p11 = scmp.ne.s32.totalorder %s29_s15, %s212_s6  ;;  %p218_p13 = scmp.lt.s32.totalorder %s212_s6, %s212_s6 }
  0x1c   :  { %p219_p0 = por %p218_p13, %p217_p12 }
  0x1e   :  { %p220_p1 = pnand %p219_p0, %p213_p11 }
  0x20   :  { %223 = shalt.err (!%p220_p1)
}
  0x21   :  { %31 = dma.hbm_to_vmem [thread:$0]  %s346_s1, 256, %s29_s15, [#allocation8]  }
  0x22   :  { %246 = dma.done.wait [#allocation5], 256  }
  0x23   :  { %247 = vsyncadd [#allocation5], 4294967040 }
  0x24   :  { %248 = dma.done.wait [#allocation8], 256  }
  0x25   :  { %249 = vsyncadd [#allocation8], 4294967040  ;;  %v42_v0 = vlaneseq  ;;  %v254_v2 = vmov 0.0   ;;  %v48_v3 = vld [vmem:[#allocation7] sm:$0xff]  ;;  %v49_v4 = vld [vmem:[#allocation7 + $0x8] sm:$0xff]  ;;  %vm255_vm3 = vmmov 1  }
  0x26   :  { %vm50_vm1 = vcmp.ne.f32.partialorder %v48_v3, %v48_v3  ;;  %vm51_vm2 = vcmp.ne.f32.partialorder %v49_v4, %v49_v4  ;;  %v54_v5 = vld [vmem:[#allocation4] sm:$0xff]  ;;  %v55_v6 = vld [vmem:[#allocation4 + $0x8] sm:$0xff]  ;;  %v256_v16 = vmov 0   ;;  %v257_v22 = vmov 1966171168  }
  0x27   :  { %vm303_vm0 = vcmp.lt.s32.totalorder %v42_v0, 256  ;;  %vm52_vm4 = vmxor %vm50_vm1, %vm255_vm3  ;;  %v85_v23 = vunpack.c.l.s4 %v257_v22  ;;  %v88_v33 = vshrl.u32 %v42_v0, 7 }
  0x28   :  { %47 = vst.msk [vmem:[#allocation3] sm:$0x3] %vm303_vm0, %v254_v2  ;;  %46 = vst.msk [vmem:[#allocation2] sm:$0x3] %vm303_vm0, %v254_v2  ;;  %v169_v8 = vsel %vm52_vm4, 1.0, %v254_v2  ;;  %v62_v9 = vsel %vm52_vm4, %v48_v3, 0.0 }
  0x29   :  { %vm311_vm5 = vmxor %vm51_vm2, %vm255_vm3  ;;  %v60_v11 = vmul.f32 %v169_v8, %v54_v5  ;;  %v106_v13 = vrot.slane %v169_v8, 4  ;;  %v56_v17 = vsel %vm52_vm4, 1, %v256_v16  ;;  %v86_v32 = vunpack.c.0.s8 %v85_v23 }
  0x2a   :  { %v170_v10 = vsel %vm311_vm5, 1.0, %v254_v2  ;;  %v63_v12 = vsel %vm311_vm5, %v49_v4, 0.0  ;;  %v57_v18 = vsel %vm311_vm5, 1, %v256_v16  ;;  %138 = vst [vmem:[%s348_s3] sm:$0xff] %v56_v17 }
  0x2b   :  { %v61_v14 = vmul.f32 %v170_v10, %v55_v6  ;;  %v112_v15 = vrot.slane %v170_v10, 4  ;;  %v64_v19 = vsub.f32 %v60_v11, %v62_v9  ;;  %v107_v20 = vadd.f32 %v169_v8, %v106_v13  ;;  %139 = vst [vmem:[%s348_s3 + $0x8] sm:$0xff] %v57_v18  ;;  %s258_s3 = smov [#allocation9]  }
  0x2c   :  { %v89_v42 = vsub.s32 %v86_v32, %v88_v33  ;;  %s155_s11 = sshll.u32 %s258_s3, 4  ;;  %s156_s11 = int_to_ptr.vmem [resolvable:$true] %s155_s11 }
  0x2d   :  { %v65_v21 = vsub.f32 %v61_v14, %v63_v12  ;;  %v113_v24 = vadd.f32 %v170_v10, %v112_v15  ;;  %v66_v25 = vmul.f32 %v64_v19, %v64_v19  ;;  %v108_v26 = vrot.slane %v107_v20, 2  ;;  %s224_s12 = scalar_lea.vmem %s156_s11, 32  ;;  %p229_p3 = scmp.lt.s32.totalorder %s156_s11, %s156_s11 }
  0x2e   :  { %p225_p2 = scmp.ne.s32.totalorder %s156_s11, %s224_s12  ;;  %p230_p4 = scmp.lt.s32.totalorder %s224_s12, %s224_s12 }
  0x2f   :  { %v67_v27 = vmul.f32 %v65_v21, %v65_v21  ;;  %v114_v28 = vrot.slane %v113_v24, 2  ;;  %v69_v29 = vrot.slane %v66_v25, 4  ;;  %v109_v30 = vadd.f32 %v108_v26, %v107_v20  ;;  %v105_v50 = vld [vmem:[#allocation3] sm:$0x3]  ;;  %v68_v57 = vld [vmem:[#allocation2] sm:$0x3] }
  0x30   :  { %p231_p5 = por %p230_p4, %p229_p3 }
  0x31   :  { %v75_v31 = vrot.slane %v67_v27, 4  ;;  %v115_v34 = vadd.f32 %v114_v28, %v113_v24  ;;  %v70_v35 = vadd.f32 %v69_v29, %v66_v25  ;;  %v110_v36 = vrot.slane %v109_v30, 1 }
  0x32   :  { %p232_p6 = pnand %p231_p5, %p225_p2 }
  0x33   :  { %v76_v37 = vadd.f32 %v75_v31, %v67_v27  ;;  %v116_v38 = vrot.slane %v115_v34, 1  ;;  %v71_v39 = vrot.slane %v70_v35, 2  ;;  %v111_v40 = vadd.f32 %v110_v36, %v109_v30 }
  0x35   :  { %v77_v41 = vrot.slane %v76_v37, 2  ;;  %v117_v43 = vadd.f32 %v116_v38, %v115_v34  ;;  %v72_v44 = vadd.f32 %v71_v39, %v70_v35 }
  0x37   :  { %v78_v45 = vadd.f32 %v77_v41, %v76_v37  ;;  %v120_v46 = vcombine.low %v111_v40, %v117_v43  ;;  %v73_v47 = vrot.slane %v72_v44, 1 }
  0x39   :  { %v127_v48 = vrot.slane %v120_v46, %v89_v42  ;;  %v79_v49 = vrot.slane %v78_v45, 1  ;;  %v74_v51 = vadd.f32 %v73_v47, %v72_v44 }
  0x3b   :  { %v134_v52 = vrot.slane %v127_v48, %v89_v42  ;;  %v80_v53 = vadd.f32 %v79_v49, %v78_v45 }
  0x3d   :  { %v136_v54 = vadd.f32 %v134_v52, %v105_v50  ;;  %v83_v55 = vcombine.low %v74_v51, %v80_v53 }
  0x3f   :  { %137 = vst.msk [vmem:[#allocation3] sm:$0x3] %vm303_vm0, %v136_v54  ;;  %v90_v56 = vrot.slane %v83_v55, %v89_v42 }
  0x41   :  { %v97_v58 = vrot.slane %v90_v56, %v89_v42 }
  0x43   :  { %v99_v59 = vadd.f32 %v97_v58, %v68_v57 }
  0x45   :  { %104 = vst.msk [vmem:[#allocation2] sm:$0x3] %vm303_vm0, %v99_v59 }
  0x46   :  { %v143_v60 = vld [vmem:[#allocation3] sm:$0x3] }
  0x47   :  { %v144_v61 = vmax.f32 %v143_v60, 1.0 }
  0x49   :  { %178 = vrcp.f32 %v144_v61 }
  0x4c   :  { %v145_v62 = vld [vmem:[#allocation2] sm:$0x3] }
  0x53   :  { %v179_v63 = vpop.eup %178 }
  0x54   :  { %v147_v0 = vmul.f32 %v179_v63, %v145_v62 }
  0x56   :  { %148 = vst.msk [vmem:[#allocation9] sm:$0x3] %vm303_vm0, %v147_v0 }
  0x57   :  { %235 = shalt.err (!%p232_p6)
}
  0x58   :  { %s236_s15 = scalar_lea.hbm %s347_s2, 32 }
  0x59   :  { %p237_p7 = scmp.ne.s32.totalorder %s347_s2, %s236_s15  ;;  %p240_p8 = scmp.lt.u32.totalorder %s236_s15, %s347_s2 }
  0x5b   :  { %p242_p9 = pnand %p240_p8, %p237_p7 }
  0x5d   :  { %245 = shalt.err (!%p242_p9)
}
  0x5e   :  { %158 = dma.vmem_to_hbm [thread:$0]  %s156_s11, 32, %s347_s2, [#allocation6]  }
  0x5f   :  { %250 = dma.done.wait [#allocation6], 32  }
  0x60   :  { %251 = vsyncadd [#allocation6], 4294967264 }
  0x61   :  { %166 = vsyncpa [#allocation5], 1 }
  0x62   :  { %167 = vsyncpa [#allocation8], 1 }
  0x63   :  { %168 = vsyncpa [#allocation6], 1 }

// kernel: tpu_custom_call.1
= control target key start
LH: loop header
LB: loop body
LE: loop exit
PB: predicated region body
PF: predicated region fallthrough
CT: control target
= control target key end

     0   :  { %9 = vsyncpa [#allocation5], 0  ;;  %s400_s0 = inlined_call_operand.hbm [shape: f32[8,256], index: 0, kind: input, shape index: {}]   ;;  %s401_s1 = inlined_call_operand.hbm [shape: f32[8,256], index: 1, kind: input, shape index: {}]   ;;  %s402_s2 = inlined_call_operand.hbm [shape: f32[1,256], index: 2, kind: output, shape index: {0}]   ;;  %s403_s3 = inlined_call_operand.hbm [shape: s8[8,256], index: 3, kind: output, shape index: {1}]  }
   0x1   :  { %10 = vsyncpa [#allocation8], 0 }
   0x2   :  { %11 = vsyncpa [#allocation6], 0 }
   0x3   :  { %12 = vsyncpa [#allocation11], 0  ;;  %s299_s12 = smov [#allocation4]   ;;  %s300_s14 = smov [#allocation7]  }
   0x4   :  { %s19_s13 = sshll.u32 %s299_s12, 4  ;;  %s29_s15 = sshll.u32 %s300_s14, 4  ;;  %s20_s13 = int_to_ptr.vmem [resolvable:$true] %s19_s13  ;;  %s30_s15 = int_to_ptr.vmem [resolvable:$true] %s29_s15 }
   0x5   :  { %s203_s18 = scalar_lea.hbm %s400_s0, 256 }
   0x6   :  { %p204_p0 = scmp.ne.s32.totalorder %s400_s0, %s203_s18  ;;  %p207_p1 = scmp.lt.u32.totalorder %s203_s18, %s400_s0 }
   0x8   :  { %p209_p2 = pnand %p207_p1, %p204_p0 }
   0xa   :  { %212 = shalt.err (!%p209_p2)
}
   0xb   :  { %s213_s23 = scalar_lea.vmem %s20_s13, 256  ;;  %p218_p4 = scmp.lt.s32.totalorder %s20_s13, %s20_s13 }
   0xc   :  { %p214_p3 = scmp.ne.s32.totalorder %s20_s13, %s213_s23  ;;  %p219_p5 = scmp.lt.s32.totalorder %s213_s23, %s213_s23 }
   0xe   :  { %p220_p6 = por %p219_p5, %p218_p4 }
  0x10   :  { %p221_p7 = pnand %p220_p6, %p214_p3 }
  0x12   :  { %224 = shalt.err (!%p221_p7)
}
  0x13   :  { %22 = dma.hbm_to_vmem [thread:$0]  %s400_s0, 256, %s20_s13, [#allocation5]  }
  0x14   :  { %s225_s28 = scalar_lea.hbm %s401_s1, 256 }
  0x15   :  { %p226_p8 = scmp.ne.s32.totalorder %s401_s1, %s225_s28  ;;  %p229_p9 = scmp.lt.u32.totalorder %s225_s28, %s401_s1 }
  0x17   :  { %p231_p10 = pnand %p229_p9, %p226_p8 }
  0x19   :  { %234 = shalt.err (!%p231_p10)
}
  0x1a   :  { %s235_s6 = scalar_lea.vmem %s30_s15, 256  ;;  %p240_p12 = scmp.lt.s32.totalorder %s30_s15, %s30_s15 }
  0x1b   :  { %p236_p11 = scmp.ne.s32.totalorder %s30_s15, %s235_s6  ;;  %p241_p13 = scmp.lt.s32.totalorder %s235_s6, %s235_s6 }
  0x1d   :  { %p242_p0 = por %p241_p13, %p240_p12 }
  0x1f   :  { %p243_p1 = pnand %p242_p0, %p236_p11 }
  0x21   :  { %246 = shalt.err (!%p243_p1)
}
  0x22   :  { %32 = dma.hbm_to_vmem [thread:$0]  %s401_s1, 256, %s30_s15, [#allocation8]  }
  0x23   :  { %291 = dma.done.wait [#allocation5], 256  }
  0x24   :  { %292 = vsyncadd [#allocation5], 4294967040 }
  0x25   :  { %293 = dma.done.wait [#allocation8], 256  }
  0x26   :  { %294 = vsyncadd [#allocation8], 4294967040  ;;  %v45_v0 = vlaneseq  ;;  %v301_v2 = vmov 0.0   ;;  %v51_v3 = vld [vmem:[#allocation7] sm:$0xff]  ;;  %v52_v4 = vld [vmem:[#allocation7 + $0x8] sm:$0xff]  ;;  %vm302_vm3 = vmmov 1  }
  0x27   :  { %vm53_vm1 = vcmp.ne.f32.partialorder %v51_v3, %v51_v3  ;;  %vm54_vm2 = vcmp.ne.f32.partialorder %v52_v4, %v52_v4  ;;  %v57_v5 = vld [vmem:[#allocation4] sm:$0xff]  ;;  %v58_v6 = vld [vmem:[#allocation4 + $0x8] sm:$0xff]  ;;  %v303_v18 = vmov 0   ;;  %v304_v21 = vmov 1966171168   ;;  %s305_s1 = smov [#allocation10]  }
  0x28   :  { %vm351_vm0 = vcmp.lt.s32.totalorder %v45_v0, 256  ;;  %vm55_vm4 = vmxor %vm53_vm1, %vm302_vm3  ;;  %v88_v22 = vunpack.c.l.s4 %v304_v21  ;;  %v91_v32 = vshrl.u32 %v45_v0, 7  ;;  %s177_s8 = sshll.u32 %s305_s1, 4  ;;  %s178_s8 = int_to_ptr.vmem [resolvable:$true] %s177_s8 }
  0x29   :  { %50 = vst.msk [vmem:[#allocation3] sm:$0x3] %vm351_vm0, %v301_v2  ;;  %49 = vst.msk [vmem:[#allocation2] sm:$0x3] %vm351_vm0, %v301_v2  ;;  %v191_v8 = vsel %vm55_vm4, 1.0, %v301_v2  ;;  %v65_v9 = vsel %vm55_vm4, %v51_v3, 0.0  ;;  %p252_p3 = scmp.lt.s32.totalorder %s178_s8, %s178_s8 }
  0x2a   :  { %vm359_vm5 = vmxor %vm54_vm2, %vm302_vm3  ;;  %v63_v11 = vmul.f32 %v191_v8, %v57_v5  ;;  %v109_v13 = vrot.slane %v191_v8, 4  ;;  %v89_v35 = vunpack.c.0.s8 %v88_v22  ;;  %s247_s9 = scalar_lea.vmem %s178_s8, 64 }
  0x2b   :  { %v192_v10 = vsel %vm359_vm5, 1.0, %v301_v2  ;;  %v66_v12 = vsel %vm359_vm5, %v52_v4, 0.0  ;;  %vm141_vm6 = vmpackc.low %vm55_vm4, %vm55_vm4  ;;  %p248_p2 = scmp.ne.s32.totalorder %s178_s8, %s247_s9  ;;  %p253_p4 = scmp.lt.s32.totalorder %s247_s9, %s247_s9 }
  0x2c   :  { %v64_v14 = vmul.f32 %v192_v10, %v58_v6  ;;  %v115_v15 = vrot.slane %v192_v10, 4  ;;  %vm142_vm7 = vmpackc.even %vm141_vm6, %vm141_vm6  ;;  %v67_v16 = vsub.f32 %v63_v11, %v65_v9  ;;  %v110_v17 = vadd.f32 %v191_v8, %v109_v13 }
  0x2d   :  { %vm143_vm8 = vmpackc.low %vm359_vm5, %vm359_vm5  ;;  %v145_v19 = vsel %vm142_vm7, 16843009, %v303_v18  ;;  %v92_v46 = vsub.s32 %v89_v35, %v91_v32  ;;  %p254_p5 = por %p253_p4, %p252_p3 }
  0x2e   :  { %v68_v20 = vsub.f32 %v64_v14, %v66_v12  ;;  %v116_v23 = vadd.f32 %v192_v10, %v115_v15  ;;  %vm144_vm9 = vmpackc.even %vm143_vm8, %vm143_vm8  ;;  %v147_v24 = vunpack.c.0.s8 %v145_v19  ;;  %v69_v25 = vmul.f32 %v67_v16, %v67_v16 }
  0x2f   :  { %v111_v26 = vrot.slane %v110_v17, 2  ;;  %v146_v27 = vsel %vm144_vm9, 16843009, %v303_v18  ;;  %p255_p6 = pnand %p254_p5, %p248_p2 }
  0x30   :  { %v70_v28 = vmul.f32 %v68_v20, %v68_v20  ;;  %v117_v29 = vrot.slane %v116_v23, 2  ;;  %v148_v30 = vunpack.c.0.s8 %v146_v27  ;;  %v72_v31 = vrot.slane %v69_v25, 4 }
  0x31   :  { %v112_v33 = vadd.f32 %v111_v26, %v110_v17 }
  0x32   :  { %v78_v34 = vrot.slane %v70_v28, 4  ;;  %v118_v36 = vadd.f32 %v117_v29, %v116_v23  ;;  %v149_v37 = vpack.c.b16 %v148_v30, %v147_v24  ;;  %v73_v38 = vadd.f32 %v72_v31, %v69_v25 }
  0x33   :  { %v113_v39 = vrot.slane %v112_v33, 1 }
  0x34   :  { %v79_v40 = vadd.f32 %v78_v34, %v70_v28  ;;  %v119_v41 = vrot.slane %v118_v36, 1  ;;  %v150_v42 = vpack.c.b8 %v149_v37, %v149_v37  ;;  %v74_v43 = vrot.slane %v73_v38, 2 }
  0x35   :  { %v114_v44 = vadd.f32 %v113_v39, %v112_v33 }
  0x36   :  { %v80_v45 = vrot.slane %v79_v40, 2  ;;  %v120_v47 = vadd.f32 %v119_v41, %v118_v36  ;;  %151 = vst [vmem:[#allocation10] sm:$0xf] %v150_v42  ;;  %v75_v48 = vadd.f32 %v74_v43, %v73_v38 }
  0x37   :  { %258 = shalt.err (!%p255_p6)
}
  0x38   :  { %s259_s12 = scalar_lea.hbm %s403_s3, 64 }
  0x39   :  { %p260_p7 = scmp.ne.s32.totalorder %s403_s3, %s259_s12  ;;  %p263_p8 = scmp.lt.u32.totalorder %s259_s12, %s403_s3 }
  0x3b   :  { %p265_p9 = pnand %p263_p8, %p260_p7 }
  0x3d   :  { %268 = shalt.err (!%p265_p9)
}
  0x3e   :  { %180 = dma.vmem_to_hbm [thread:$0]  %s178_s8, 64, %s403_s3, [#allocation11]   ;;  %v81_v49 = vadd.f32 %v80_v45, %v79_v40  ;;  %v123_v50 = vcombine.low %v114_v44, %v120_v47  ;;  %v76_v51 = vrot.slane %v75_v48, 1  ;;  %v108_v54 = vld [vmem:[#allocation3] sm:$0x3] }
  0x3f   :  { %v71_v61 = vld [vmem:[#allocation2] sm:$0x3]  ;;  %s306_s3 = smov [#allocation9]  }
  0x40   :  { %v130_v52 = vrot.slane %v123_v50, %v92_v46  ;;  %v82_v53 = vrot.slane %v81_v49, 1  ;;  %v77_v55 = vadd.f32 %v76_v51, %v75_v48  ;;  %s167_s19 = sshll.u32 %s306_s3, 4  ;;  %s168_s19 = int_to_ptr.vmem [resolvable:$true] %s167_s19 }
  0x41   :  { %s269_s20 = scalar_lea.vmem %s168_s19, 32  ;;  %p274_p11 = scmp.lt.s32.totalorder %s168_s19, %s168_s19 }
  0x42   :  { %v137_v56 = vrot.slane %v130_v52, %v92_v46  ;;  %v83_v57 = vadd.f32 %v82_v53, %v81_v49  ;;  %p270_p10 = scmp.ne.s32.totalorder %s168_s19, %s269_s20  ;;  %p275_p12 = scmp.lt.s32.totalorder %s269_s20, %s269_s20 }
  0x44   :  { %v139_v58 = vadd.f32 %v137_v56, %v108_v54  ;;  %v86_v59 = vcombine.low %v77_v55, %v83_v57  ;;  %p276_p13 = por %p275_p12, %p274_p11 }
  0x46   :  { %140 = vst.msk [vmem:[#allocation3] sm:$0x3] %vm351_vm0, %v139_v58  ;;  %v93_v60 = vrot.slane %v86_v59, %v92_v46  ;;  %p277_p0 = pnand %p276_p13, %p270_p10 }
  0x48   :  { %v100_v62 = vrot.slane %v93_v60, %v92_v46 }
  0x4a   :  { %v102_v63 = vadd.f32 %v100_v62, %v71_v61 }
  0x4c   :  { %107 = vst.msk [vmem:[#allocation2] sm:$0x3] %vm351_vm0, %v102_v63 }
  0x4d   :  { %v155_v0 = vld [vmem:[#allocation3] sm:$0x3] }
  0x4e   :  { %v156_v2 = vmax.f32 %v155_v0, 1.0 }
  0x50   :  { %201 = vrcp.f32 %v156_v2 }
  0x53   :  { %v157_v3 = vld [vmem:[#allocation2] sm:$0x3] }
  0x5a   :  { %v202_v4 = vpop.eup %201 }
  0x5b   :  { %v159_v5 = vmul.f32 %v202_v4, %v157_v3 }
  0x5d   :  { %160 = vst.msk [vmem:[#allocation9] sm:$0x3] %vm351_vm0, %v159_v5 }
  0x5e   :  { %280 = shalt.err (!%p277_p0)
}
  0x5f   :  { %s281_s23 = scalar_lea.hbm %s402_s2, 32 }
  0x60   :  { %p282_p1 = scmp.ne.s32.totalorder %s402_s2, %s281_s23  ;;  %p285_p2 = scmp.lt.u32.totalorder %s281_s23, %s402_s2 }
  0x62   :  { %p287_p3 = pnand %p285_p2, %p282_p1 }
  0x64   :  { %290 = shalt.err (!%p287_p3)
}
  0x65   :  { %170 = dma.vmem_to_hbm [thread:$0]  %s168_s19, 32, %s402_s2, [#allocation6]  }
  0x66   :  { %295 = dma.done.wait [#allocation6], 32  }
  0x67   :  { %296 = vsyncadd [#allocation6], 4294967264 }
  0x68   :  { %297 = dma.done.wait [#allocation11], 64  }
  0x69   :  { %298 = vsyncadd [#allocation11], 4294967232 }
  0x6a   :  { %187 = vsyncpa [#allocation5], 1 }
  0x6b   :  { %188 = vsyncpa [#allocation8], 1 }
  0x6c   :  { %189 = vsyncpa [#allocation6], 1 }
  0x6d   :  { %190 = vsyncpa [#allocation11], 1 }

</bundles_post_ra>
